<compile_context>
chip_gen: v7x
topology: tpu7x:2x2x1
jax: 0.10.0
libtpu: 0.0.40
codegen_flags: <defaults>
</compile_context>

<pallas_src>
import math

import jax
import jax.numpy as jnp
from jax.experimental import pallas as pl
from jax.experimental.pallas import tpu as pltpu


# ----------------------------------------------------------------------------
# One-time parameter prep (hoisted out of the per-step path).
# ----------------------------------------------------------------------------
def prepare_params(weight_ih, weight_hh):
    """Pack both gate weights into one operand for a single fused MXU dot.

    weight_ih : (2H, In), weight_hh : (2H, H)
      -> w_packed : (In + H, 2H)
         rows [:In]  = weight_ih.T   (x contribution)
         rows [In:]  = weight_hh.T   (h contribution)
         cols [:H]   = forget gate,  cols [H:] = output gate
    """
    return jnp.concatenate([weight_ih.T, weight_hh.T], axis=0)


def _full_spec(a):
    # Full-array block for a grid-() pallas_call (block == array dims).
    return pl.BlockSpec(a.shape, lambda: (0,) * a.ndim)


# ----------------------------------------------------------------------------
# Single-step kernel (exactly the module's forward; one fused MXU dot).
# ----------------------------------------------------------------------------
def _lstm_celli_step_kernel(x_ref, hx_ref, cx_ref, w_ref, b_ref, out_ref,
                            xh_scr):
    In = x_ref.shape[-1]
    H = cx_ref.shape[-1]

    # Build the fused operand [x | hx] in VMEM scratch (no concat temporary).
    xh_scr[:, :In] = x_ref[...]
    xh_scr[:, In:] = hx_ref[...]

    pre = (jnp.dot(xh_scr[...], w_ref[...],
                   preferred_element_type=jnp.float32) + b_ref[...])
    ft = jax.nn.sigmoid(pre[:, :H])
    ot = jnp.tanh(pre[:, H:])
    ct = cx_ref[...] * ft
    ht = jnp.tanh(ct) * ot

    # Direct slab stores (no output concatenate).
    out_ref[:, :H] = ct.astype(out_ref.dtype)
    out_ref[:, H:] = ht.astype(out_ref.dtype)


def lstm_celli_forward(x, hx, cx, w_packed, bias):
    """One LSTMCelli step (genuine single-step use only). Returns (ct, ht)."""
    B, In = x.shape
    H = hx.shape[-1]
    assert w_packed.shape == (In + H, 2 * H) and bias.shape == (B, 2 * H)

    out = pl.pallas_call(
        _lstm_celli_step_kernel,
        out_shape=jax.ShapeDtypeStruct((B, 2 * H), x.dtype),
        grid=(),
        in_specs=[_full_spec(x), _full_spec(hx), _full_spec(cx),
                  _full_spec(w_packed), _full_spec(bias)],
        out_specs=pl.BlockSpec((B, 2 * H), lambda: (0, 0)),
        scratch_shapes=[pltpu.VMEM((B, In + H), jnp.float32)],
    )(x, hx, cx, w_packed, bias)
    return out[:, :H], out[:, H:]          # (ct, ht)


# ----------------------------------------------------------------------------
# Sequence kernel: T recurrent steps inside a single grid point.
#   - everything VMEM resident (few KiB total at these shapes)
#   - loop fully unrolled at trace time -> static lane offsets, no per-step
#     grid/pipeline overhead, full scheduler visibility across steps
#   - h/c carried as values; bias/weights loaded once before the loop
#   - output is a single lane-dense (B, T*2H) slab
# ----------------------------------------------------------------------------
def _lstm_celli_seq_kernel(x_ref, h0_ref, c0_ref, w_ref, b_ref, out_ref,
                           xh_scr):
    T, _, In = x_ref.shape
    H = h0_ref.shape[-1]

    w = w_ref[...]          # (In+H, 2H) — hoisted
    b = b_ref[...]          # (B, 2H)    — hoisted (no per-step broadcast)
    h = h0_ref[...]
    c = c0_ref[...]

    # Trace-time full unroll (static T). Static indices keep every slice and
    # store lane-offset static, which is what the review's unroll asks for.
    for t in range(T):
        xh_scr[:, :In] = x_ref[t]
        xh_scr[:, In:] = h
        pre = jnp.dot(xh_scr[...], w, preferred_element_type=jnp.float32) + b
        ft = jax.nn.sigmoid(pre[:, :H])
        ot = jnp.tanh(pre[:, H:])
        c = c * ft
        h = jnp.tanh(c) * ot
        off = 2 * H * t
        out_ref[:, off:off + H] = c.astype(out_ref.dtype)
        out_ref[:, off + H:off + 2 * H] = h.astype(out_ref.dtype)


def lstm_celli_sequence(x_seq, h0, c0, w_packed, bias):
    """Run T LSTMCelli steps in one pallas_call (one grid point).

    x_seq : (T, B, In); h0, c0 : (B, H)
    Returns (ct_seq, ht_seq), each (B, T, H)  [batch-major, lane-dense slab].
    """
    T, B, In = x_seq.shape
    H = h0.shape[-1]
    assert w_packed.shape == (In + H, 2 * H) and bias.shape == (B, 2 * H)

    out = pl.pallas_call(
        _lstm_celli_seq_kernel,
        out_shape=jax.ShapeDtypeStruct((B, T * 2 * H), x_seq.dtype),
        grid=(),
        in_specs=[_full_spec(x_seq), _full_spec(h0), _full_spec(c0),
                  _full_spec(w_packed), _full_spec(bias)],
        out_specs=pl.BlockSpec((B, T * 2 * H), lambda: (0, 0)),
        scratch_shapes=[pltpu.VMEM((B, In + H), jnp.float32)],
    )(x_seq, h0, c0, w_packed, bias)

    out = out.reshape(B, T, 2 * H)
    return out[..., :H], out[..., H:]      # (ct_seq, ht_seq), batch-major


# ----------------------------------------------------------------------------
# Init + pure-JAX reference (mirrors the PyTorch module).
# ----------------------------------------------------------------------------
def init_params(key, input_size, hidden_size, batch_size):
    std = 1.0 / math.sqrt(hidden_size)
    k1, k2, k3 = jax.random.split(key, 3)
    weight_ih = jax.random.uniform(
        k1, (2 * hidden_size, input_size), jnp.float32, -std, std)
    weight_hh = jax.random.uniform(
        k2, (2 * hidden_size, hidden_size), jnp.float32, -std, std)
    bias = jax.random.uniform(
        k3, (batch_size, 2 * hidden_size), jnp.float32, -std, std)
    return weight_ih, weight_hh, bias


def _reference_step(x, hx, cx, weight_ih, weight_hh, bias):
    H = weight_hh.shape[1]
    wxf, wxo = weight_ih[:H], weight_ih[H:]
    whf, who = weight_hh[:H], weight_hh[H:]
    bf, bo = bias[:, :H], bias[:, H:]
    ft = jax.nn.sigmoid(x @ wxf.T + hx @ whf.T + bf)
    ot = jnp.tanh(x @ wxo.T + hx @ who.T + bo)
    ct = cx * ft
    ht = jnp.tanh(ct) * ot
    return ct, ht


if __name__ == "__main__":
    input_size, hidden_size, batch_size, T = 16, 32, 8, 8

    key = jax.random.PRNGKey(0)
    kp, kx, kh, kc, ks = jax.random.split(key, 5)

    weight_ih, weight_hh, bias = init_params(
        kp, input_size, hidden_size, batch_size)
    # One-time parameter packing (hoisted out of the per-step path).
    w_packed = prepare_params(weight_ih, weight_hh)

    x = jax.random.normal(kx, (batch_size, input_size), jnp.float32)
    hx = jax.random.normal(kh, (batch_size, hidden_size), jnp.float32)
    cx = jax.random.normal(kc, (batch_size, hidden_size), jnp.float32)

    # --- single step (matches LSTMCelli.forward) ---
    ct, ht = lstm_celli_forward(x, hx, cx, w_packed, bias)
    jax.block_until_ready((ct, ht))
    ct_ref, ht_ref = _reference_step(x, hx, cx, weight_ih, weight_hh, bias)
    assert jnp.allclose(ct, ct_ref, atol=1e-5, rtol=1e-5)
    assert jnp.allclose(ht, ht_ref, atol=1e-5, rtol=1e-5)

    # --- T steps fused into one grid point (overhead amortization) ---
    x_seq = jax.random.normal(ks, (T, batch_size, input_size), jnp.float32)
    ct_seq, ht_seq = lstm_celli_sequence(x_seq, hx, cx, w_packed, bias)
    jax.block_until_ready((ct_seq, ht_seq))

    h_r, c_r = hx, cx
    for t in range(T):
        c_r, h_r = _reference_step(x_seq[t], h_r, c_r,
                                   weight_ih, weight_hh, bias)
        assert jnp.allclose(ct_seq[:, t], c_r, atol=1e-4, rtol=1e-4)
        assert jnp.allclose(ht_seq[:, t], h_r, atol=1e-4, rtol=1e-4)

    print("KERNEL_OK")
</pallas_src>

<mosaic_0001>
module attributes {stable_mosaic.version = 11 : i64} {
  func.func @_lstm_celli_step_kernel(%arg0: memref<8x16xf32, #tpu.memory_space<vmem>>, %arg1: memref<8x32xf32, #tpu.memory_space<vmem>>, %arg2: memref<8x32xf32, #tpu.memory_space<vmem>>, %arg3: memref<48x64xf32, #tpu.memory_space<vmem>>, %arg4: memref<8x64xf32, #tpu.memory_space<vmem>>, %arg5: memref<8x64xf32, #tpu.memory_space<vmem>>, %arg6: memref<8x48xf32, #tpu.memory_space<vmem>>) attributes {dimension_semantics = [], scalar_prefetch = 0 : i64, scratch_operands = 1 : i64, tpu.core_type = #tpu.core_type<tc>} {
    %c0 = arith.constant 0 : index
    %c0_0 = arith.constant 0 : index
    %0 = vector.load %arg0[%c0, %c0_0] : memref<8x16xf32, #tpu.memory_space<vmem>>, vector<8x16xf32>
    %c0_1 = arith.constant 0 : index
    %c0_2 = arith.constant 0 : index
    %1 = vector.load %arg6[%c0_1, %c0_2] : memref<8x48xf32, #tpu.memory_space<vmem>>, vector<8x16xf32>
    tpu.vector_store %arg6[%c0_1, %c0_2], %0 {strides = array<i32>} : memref<8x48xf32, #tpu.memory_space<vmem>>, vector<8x16xf32>,
    %c0_3 = arith.constant 0 : index
    %c0_4 = arith.constant 0 : index
    %2 = vector.load %arg1[%c0_3, %c0_4] : memref<8x32xf32, #tpu.memory_space<vmem>>, vector<8x32xf32>
    %c0_5 = arith.constant 0 : index
    %c16 = arith.constant 16 : index
    %3 = vector.load %arg6[%c0_5, %c16] : memref<8x48xf32, #tpu.memory_space<vmem>>, vector<8x32xf32>
    tpu.vector_store %arg6[%c0_5, %c16], %2 {strides = array<i32>} : memref<8x48xf32, #tpu.memory_space<vmem>>, vector<8x32xf32>,
    %c0_6 = arith.constant 0 : index
    %c0_7 = arith.constant 0 : index
    %4 = vector.load %arg6[%c0_6, %c0_7] : memref<8x48xf32, #tpu.memory_space<vmem>>, vector<8x48xf32>
    %c0_8 = arith.constant 0 : index
    %c0_9 = arith.constant 0 : index
    %5 = vector.load %arg3[%c0_8, %c0_9] : memref<48x64xf32, #tpu.memory_space<vmem>>, vector<48x64xf32>
    %cst = arith.constant dense<0.000000e+00> : vector<8x64xf32>
    %6 = tpu.matmul %4, %5, %cst {dimension_numbers = #tpu.dot_dimension_numbers<[1], [0], [0], [1], [0, 0, 1, 1], [], []>} : vector<8x48xf32>, vector<48x64xf32>, vector<8x64xf32> -> vector<8x64xf32>
    %c0_10 = arith.constant 0 : index
    %c0_11 = arith.constant 0 : index
    %7 = vector.load %arg4[%c0_10, %c0_11] : memref<8x64xf32, #tpu.memory_space<vmem>>, vector<8x64xf32>
    %8 = arith.addf %6, %7 : vector<8x64xf32>
    %9 = vector.extract_strided_slice %8 {offsets = [0, 0], sizes = [8, 32], strides = [1, 1]} : vector<8x64xf32> to vector<8x32xf32>
    %10 = arith.negf %9 : vector<8x32xf32>
    %11 = math.exp %10 : vector<8x32xf32>
    %cst_12 = arith.constant 1.000000e+00 : f32
    %12 = vector.broadcast %cst_12 : f32 to vector<8x32xf32>
    %13 = arith.addf %12, %11 : vector<8x32xf32>
    %14 = arith.divf %12, %13 : vector<8x32xf32>
    %15 = vector.extract_strided_slice %8 {offsets = [0, 32], sizes = [8, 32], strides = [1, 1]} : vector<8x64xf32> to vector<8x32xf32>
    %16 = math.tanh %15 : vector<8x32xf32>
    %c0_13 = arith.constant 0 : index
    %c0_14 = arith.constant 0 : index
    %17 = vector.load %arg2[%c0_13, %c0_14] : memref<8x32xf32, #tpu.memory_space<vmem>>, vector<8x32xf32>
    %18 = arith.mulf %17, %14 : vector<8x32xf32>
    %19 = math.tanh %18 : vector<8x32xf32>
    %20 = arith.mulf %19, %16 : vector<8x32xf32>
    %c0_15 = arith.constant 0 : index
    %c0_16 = arith.constant 0 : index
    %21 = vector.load %arg5[%c0_15, %c0_16] : memref<8x64xf32, #tpu.memory_space<vmem>>, vector<8x32xf32>
    tpu.vector_store %arg5[%c0_15, %c0_16], %18 {strides = array<i32>} : memref<8x64xf32, #tpu.memory_space<vmem>>, vector<8x32xf32>,
    %c0_17 = arith.constant 0 : index
    %c32 = arith.constant 32 : index
    %22 = vector.load %arg5[%c0_17, %c32] : memref<8x64xf32, #tpu.memory_space<vmem>>, vector<8x32xf32>
    tpu.vector_store %arg5[%c0_17, %c32], %20 {strides = array<i32>} : memref<8x64xf32, #tpu.memory_space<vmem>>, vector<8x32xf32>,
    return
  }
}

</mosaic_0001>

<bundles_post_ra>
// kernel: tpu_custom_call.1
= control target key start
LH: loop header
LB: loop body
LE: loop exit
PB: predicated region body
PF: predicated region fallthrough
CT: control target
= control target key end

     0   :  { %10 = vsyncpa [#allocation4], 0  ;;  %s487_s0 = inlined_call_operand.hbm [shape: f32[8,16], index: 0, kind: input, shape index: {}]   ;;  %s488_s1 = inlined_call_operand.hbm [shape: f32[8,32], index: 1, kind: input, shape index: {}]   ;;  %s489_s2 = inlined_call_operand.hbm [shape: f32[8,32], index: 2, kind: input, shape index: {}]   ;;  %s490_s3 = inlined_call_operand.hbm [shape: f32[48,64], index: 3, kind: input, shape index: {}]   ;;  %s491_s4 = inlined_call_operand.vmem [shape: f32[8,64], index: 4, kind: input, shape index: {}]   ;;  %s492_s5 = inlined_call_operand.hbm [shape: f32[8,64], index: 5, kind: output, shape index: {}]  }
   0x1   :  { %11 = vsyncpa [#allocation7], 0 }
   0x2   :  { %12 = vsyncpa [#allocation10], 0 }
   0x3   :  { %13 = vsyncpa [#allocation5], 0  ;;  %s374_s18 = smov [#allocation6]   ;;  %s375_s20 = smov [#allocation3]  }
   0x4   :  { %s30_s19 = sshll.u32 %s374_s18, 4  ;;  %s20_s21 = sshll.u32 %s375_s20, 4  ;;  %s31_s19 = int_to_ptr.vmem [resolvable:$true] %s30_s19  ;;  %s21_s21 = int_to_ptr.vmem [resolvable:$true] %s20_s21 }
   0x5   :  { %s256_s24 = scalar_lea.hbm %s488_s1, 128 }
   0x6   :  { %p257_p0 = scmp.ne.s32.totalorder %s488_s1, %s256_s24  ;;  %p260_p1 = scmp.lt.u32.totalorder %s256_s24, %s488_s1 }
   0x8   :  { %p262_p2 = pnand %p260_p1, %p257_p0 }
   0xa   :  { %265 = shalt.err (!%p262_p2)
}
   0xb   :  { %s266_s29 = scalar_lea.vmem %s31_s19, 128  ;;  %p271_p4 = scmp.lt.s32.totalorder %s31_s19, %s31_s19 }
   0xc   :  { %p267_p3 = scmp.ne.s32.totalorder %s31_s19, %s266_s29  ;;  %p272_p5 = scmp.lt.s32.totalorder %s266_s29, %s266_s29 }
   0xe   :  { %p273_p6 = por %p272_p5, %p271_p4 }
  0x10   :  { %p274_p7 = pnand %p273_p6, %p267_p3 }
  0x12   :  { %277 = shalt.err (!%p274_p7)
}
  0x13   :  { %33 = dma.hbm_to_vmem [thread:$0]  %s488_s1, 128, %s31_s19, [#allocation7]  }
  0x14   :  { %s278_s9 = scalar_lea.hbm %s487_s0, 128 }
  0x15   :  { %p279_p8 = scmp.ne.s32.totalorder %s487_s0, %s278_s9  ;;  %p282_p9 = scmp.lt.u32.totalorder %s278_s9, %s487_s0 }
  0x17   :  { %p284_p10 = pnand %p282_p9, %p279_p8 }
  0x19   :  { %287 = shalt.err (!%p284_p10)
}
  0x1a   :  { %s288_s14 = scalar_lea.vmem %s21_s21, 128  ;;  %p293_p12 = scmp.lt.s32.totalorder %s21_s21, %s21_s21 }
  0x1b   :  { %p289_p11 = scmp.ne.s32.totalorder %s21_s21, %s288_s14  ;;  %p294_p13 = scmp.lt.s32.totalorder %s288_s14, %s288_s14 }
  0x1d   :  { %p295_p0 = por %p294_p13, %p293_p12 }
  0x1f   :  { %p296_p1 = pnand %p295_p0, %p289_p11 }
  0x21   :  { %299 = shalt.err (!%p296_p1)
}
  0x22   :  { %23 = dma.hbm_to_vmem [thread:$0]  %s487_s0, 128, %s21_s21, [#allocation4]  }
  0x23   :  { %s376_s16 = smov [#allocation8]   ;;  %s377_s18 = smov [#allocation9]  }
  0x24   :  { %s40_s17 = sshll.u32 %s376_s16, 4  ;;  %s49_s19 = sshll.u32 %s377_s18, 4  ;;  %s41_s17 = int_to_ptr.vmem [resolvable:$true] %s40_s17  ;;  %s441_s19 = int_to_ptr.vmem [resolvable:$true] %s49_s19 }
  0x25   :  { %s300_s23 = scalar_lea.hbm %s489_s2, 128 }
  0x26   :  { %p301_p2 = scmp.ne.s32.totalorder %s489_s2, %s300_s23  ;;  %p304_p3 = scmp.lt.u32.totalorder %s300_s23, %s489_s2 }
  0x28   :  { %p306_p4 = pnand %p304_p3, %p301_p2 }
  0x2a   :  { %309 = shalt.err (!%p306_p4)
}
  0x2b   :  { %s310_s0 = scalar_lea.vmem %s41_s17, 128  ;;  %p315_p6 = scmp.lt.s32.totalorder %s41_s17, %s41_s17 }
  0x2c   :  { %p311_p5 = scmp.ne.s32.totalorder %s41_s17, %s310_s0  ;;  %p316_p7 = scmp.lt.s32.totalorder %s310_s0, %s310_s0 }
  0x2e   :  { %p317_p8 = por %p316_p7, %p315_p6 }
  0x30   :  { %p318_p9 = pnand %p317_p8, %p311_p5 }
  0x32   :  { %321 = shalt.err (!%p318_p9)
}
  0x33   :  { %43 = dma.hbm_to_vmem [thread:$0]  %s489_s2, 128, %s41_s17, [#allocation7]  }
  0x34   :  { %s322_s6 = scalar_lea.hbm %s490_s3, 768 }
  0x35   :  { %p323_p10 = scmp.ne.s32.totalorder %s490_s3, %s322_s6  ;;  %p326_p11 = scmp.lt.u32.totalorder %s322_s6, %s490_s3 }
  0x37   :  { %p328_p12 = pnand %p326_p11, %p323_p10 }
  0x39   :  { %331 = shalt.err (!%p328_p12)
}
  0x3a   :  { %s332_s11 = scalar_lea.vmem %s441_s19, 768  ;;  %p337_p0 = scmp.lt.s32.totalorder %s441_s19, %s441_s19 }
  0x3b   :  { %p333_p13 = scmp.ne.s32.totalorder %s441_s19, %s332_s11  ;;  %p338_p1 = scmp.lt.s32.totalorder %s332_s11, %s332_s11 }
  0x3d   :  { %p339_p2 = por %p338_p1, %p337_p0 }
  0x3f   :  { %p340_p3 = pnand %p339_p2, %p333_p13 }
  0x41   :  { %343 = shalt.err (!%p340_p3)
}
  0x42   :  { %s378_s2 = smov 128   ;;  %s379_s12 = smov 8  }
  0x43   :  { %55 = dma.hbm_to_vmem [thread:$0]  %s490_s3, 768, %s441_s19, [#allocation10], %s378_s2, %s378_s2, %s379_s12  }
  0x44   :  { %366 = dma.done.wait [#allocation4], 128  }
  0x45   :  { %367 = vsyncadd [#allocation4], 4294967168 }
  0x46   :  { %368 = dma.done.wait [#allocation7], 256  }
  0x47   :  { %369 = vsyncadd [#allocation7], 4294967040 }
  0x48   :  { %370 = dma.done.wait [#allocation10], 768  }
  0x49   :  { %371 = vsyncadd [#allocation10], 4294966528  ;;  %v380_v0 = vmov 0.0|0.0   ;;  %vm381_vm0 = vmmov 0   ;;  %v382_v1 = vmov 0.0   ;;  %vm71_vm1 = vcmask 130048  }
  0x4a   :  { %226 = vmatprep.subr.bf16.mxu0 %v380_v0  ;;  %223 = vmatprep.mubr.msk.f32.mxu0 %vm381_vm0, %v382_v1  ;;  %v73_v2 = vld [vmem:[#allocation6] sm:$0xff]  ;;  %v81_v3 = vld [vmem:[#allocation9] sm:$0xff]  ;;  %v82_v4 = vld [vmem:[#allocation9 + $0x8] sm:$0xff]  ;;  %s383_s1 = smov 16   ;;  %vm78_vm2 = vcmask 392320   ;;  %vm88_vm3 = vcmask 392192  }
  0x4b   :  { %75 = vrot.lane.b32.xlu0 %v73_v2, %s383_s1  ;;  %v227_v5 = vpack.c.bf16 %v82_v4, %v81_v3  ;;  %v70_v6 = vld [vmem:[#allocation3] sm:$0xff]  ;;  %v83_v7 = vld [vmem:[#allocation9 + $0x10] sm:$0xff]  ;;  %v84_v8 = vld [vmem:[#allocation9 + $0x18] sm:$0xff]  ;;  %s384_s16 = smov 96   ;;  %vm177_vm4 = vcmask 261120   ;;  %s386_s17 = smov [#allocation11]  }
  0x4c   :  { %72 = vst.msk [vmem:[#allocation2] sm:$0xff] %vm71_vm1, %v70_v6  ;;  %v230_v9 = vpack.c.bf16 %v84_v8, %v83_v7  ;;  %v85_v10 = vld [vmem:[#allocation9 + $0x20] sm:$0xff]  ;;  %v86_v11 = vld [vmem:[#allocation9 + $0x28] sm:$0xff]  ;;  %v169_v23 = vld [vmem:[#allocation8] sm:$0xff]  ;;  %s191_s18 = sshll.u32 %s386_s17, 4  ;;  %vm183_vm5 = vcmask 523520   ;;  %s192_s18 = int_to_ptr.vmem [resolvable:$true] %s191_s18 }
  0x4d   :  { %228 = vmatpush3.bf16.msra.mxu0 %v227_v5  ;;  %v233_v12 = vpack.c.bf16 %v86_v11, %v85_v10  ;;  %v87_v15 = vld [vmem:[%s491_s4] sm:$0xff]  ;;  %s385_s4 = smov 32   ;;  %s344_s19 = scalar_lea.vmem %s192_s18, 128 }
  0x4e   :  { %229 = vmatprep.subr.bf16.mxu0 %v380_v0  ;;  %p345_p4 = scmp.ne.s32.totalorder %s192_s18, %s344_s19  ;;  %p349_p5 = scmp.lt.s32.totalorder %s192_s18, %s192_s18 }
  0x4f   :  { %p350_p6 = scmp.lt.s32.totalorder %s344_s19, %s344_s19 }
  0x51   :  { %231 = vmatpush3.bf16.msra.mxu0 %v230_v9  ;;  %p351_p7 = por %p350_p6, %p349_p5 }
  0x52   :  { %232 = vmatprep.subr.bf16.mxu0 %v380_v0 }
  0x53   :  { %p352_p8 = pnand %p351_p7, %p345_p4 }
  0x55   :  { %234 = vmatpush3.bf16.msra.mxu0 %v233_v12 }
  0xbd   :  { %v76_v13 = vpop.permute.xlu0 %75 }
  0xbe   :  { %79 = vst.msk [vmem:[#allocation2] sm:$0xff] %vm78_vm2, %v76_v13 }
  0xc5   :  { %v80_v14 = vld [vmem:[#allocation2] sm:$0xff] }
  0xc6   :  { %224 = vmatmul.mubr.msk.f32.vlgmr.msra.gmra.mrb[0].mxu0 %vm88_vm3, %v80_v14 }
 0x199   :  { %v158_v16 = vpop.f32.mrb[0].mxu0 }
 0x19a   :  { %v159_v17 = vadd.f32 %v158_v16, %v87_v15  ;;  %v225_v18 = vpop.f32.mrb[1].mxu0 }
 0x19c   :  { %v203_v19 = vmul.f32 -1.442695, %v159_v17  ;;  %248 = vtanh.f32 %v159_v17 }
 0x19e   :  { %250 = vpow2.f32 %v203_v19 }
 0x1a6   :  { %v249_v20 = vpop.eup %248 }
 0x1a7   :  { %173 = vrot.lane.b32.xlu0 %v249_v20, %s384_s16 }
 0x1a8   :  { %v251_v21 = vpop.eup %250 }
 0x1a9   :  { %v165_v22 = vadd.f32 1.0, %v251_v21 }
 0x1ab   :  { %252 = vrcp.f32 %v165_v22 }
 0x1b5   :  { %v253_v24 = vpop.eup %252 }
 0x1b6   :  { %v170_v25 = vmul.f32 %v253_v24, %v169_v23 }
 0x1b8   :  { %178 = vst.msk [vmem:[#allocation11] sm:$0xff] %vm177_vm4, %v170_v25  ;;  %254 = vtanh.f32 %v170_v25 }
 0x1c2   :  { %v255_v26 = vpop.eup %254 }
 0x219   :  { %v174_v27 = vpop.permute.xlu0 %173 }
 0x21a   :  { %v176_v28 = vmul.f32 %v255_v26, %v174_v27 }
 0x21c   :  { %180 = vrot.lane.b32.xlu1 %v176_v28, %s385_s4 }
 0x28e   :  { %v181_v29 = vpop.permute.xlu1 %180 }
 0x28f   :  { %184 = vst.msk [vmem:[#allocation11] sm:$0xff] %vm183_vm5, %v181_v29 }
 0x290   :  { %355 = shalt.err (!%p352_p8)
}
 0x291   :  { %s356_s23 = scalar_lea.hbm %s492_s5, 128 }
 0x292   :  { %p357_p9 = scmp.ne.s32.totalorder %s492_s5, %s356_s23  ;;  %p360_p10 = scmp.lt.u32.totalorder %s356_s23, %s492_s5 }
 0x294   :  { %p362_p11 = pnand %p360_p10, %p357_p9 }
 0x296   :  { %365 = shalt.err (!%p362_p11)
}
 0x297   :  { %194 = dma.vmem_to_hbm [thread:$0]  %s192_s18, 128, %s492_s5, [#allocation5]  }
 0x298   :  { %372 = dma.done.wait [#allocation5], 128  }
 0x299   :  { %373 = vsyncadd [#allocation5], 4294967168 }
 0x29a   :  { %198 = vsyncpa [#allocation4], 1 }
 0x29b   :  { %199 = vsyncpa [#allocation7], 1 }
 0x29c   :  { %200 = vsyncpa [#allocation10], 1 }
 0x29d   :  { %201 = vsyncpa [#allocation5], 1 }

</bundles_post_ra>
